<compile_context>
chip_gen: v7x
topology: tpu7x:2x2x1
jax: 0.10.0
libtpu: 0.0.40
codegen_flags: <defaults>
</compile_context>

<pallas_src>
import jax
import jax.numpy as jnp
from jax.experimental import pallas as pl
from jax.experimental.pallas import tpu as pltpu


def logistic_kernel(x_ref, w_ref, b_ref, o_ref):
    # x_ref: (TB, D) VMEM, w_ref: (1, D) VMEM (resident), b_ref: (1,) SMEM,
    # o_ref: (TB, 1) VMEM.
    x = x_ref[...]                                   # (TB, D)
    w = w_ref[...]                                   # (1, D), broadcasts on sublanes
    b = b_ref[0]                                     # scalar from SMEM
    # Linear layer as VPU multiply + cross-lane reduction (out_features == 1,
    # so the MXU would run at 1/256 column utilization; VPU+XLU is free here).
    z = jnp.sum(x * w, axis=-1, keepdims=True) + b   # (TB, 1), f32
    # Sigmoid: exp goes to the EUP; no explicit divide on the VPU.
    o_ref[...] = jax.nn.sigmoid(z).astype(o_ref.dtype)


def _pick_block_b(batch, input_dim, vmem_budget_bytes=16 * 1024 * 1024):
    """Largest batch tile (multiple of 8) whose double-buffered x tile fits budget."""
    bytes_per_row = input_dim * 4                     # f32
    max_tb = max(8, vmem_budget_bytes // (2 * bytes_per_row))  # 2x for double buffer
    tb = min(batch, 512, max_tb)
    tb = max(8, (tb // 8) * 8)                        # f32 sublane alignment
    return tb


def logistic_regression(x, weight, bias):
    """Pallas equivalent of torch.sigmoid(nn.Linear(input_dim, 1)(x)).

    x:      (batch, input_dim) float32
    weight: (1, input_dim)     float32
    bias:   (1,)               float32
    returns (batch, 1)         float32
    """
    x = jnp.asarray(x, jnp.float32)
    weight = jnp.asarray(weight, jnp.float32).reshape(1, -1)
    bias = jnp.asarray(bias, jnp.float32).reshape(1)

    B, D = x.shape
    TB = _pick_block_b(B, D)

    # Pad batch to a multiple of the tile (padded rows are sliced off after).
    Bp = pl.cdiv(B, TB) * TB
    if Bp != B:
        x = jnp.pad(x, ((0, Bp - B), (0, 0)))

    out = pl.pallas_call(
        logistic_kernel,
        out_shape=jax.ShapeDtypeStruct((Bp, 1), jnp.float32),
        grid_spec=pl.GridSpec(
            grid=(Bp // TB,),
            in_specs=[
                # x: stream batch tiles.
                pl.BlockSpec((TB, D), lambda i: (i, 0)),
                # weight: stays resident in VMEM across all grid steps.
                pl.BlockSpec((1, D), lambda i: (0, 0)),
                # bias: scalar in SMEM, no VMEM tile / DMA stream.
                pl.BlockSpec(memory_space=pltpu.MemorySpace.SMEM),
            ],
            out_specs=pl.BlockSpec((TB, 1), lambda i: (i, 0)),
        ),
        compiler_params=pltpu.CompilerParams(
            dimension_semantics=("parallel",),        # megacore sharding on v7x
        ),
    )(x, weight, bias)

    return out[:B]


if __name__ == "__main__":
    key = jax.random.PRNGKey(0)
    kx, kw, kb, kx2 = jax.random.split(key, 4)

    batch, input_dim = 64, 128
    x = jax.random.normal(kx, (batch, input_dim), dtype=jnp.float32)
    # nn.Linear default init: U(-1/sqrt(in), 1/sqrt(in)), reproduced deterministically.
    bound = 1.0 / jnp.sqrt(input_dim)
    weight = jax.random.uniform(kw, (1, input_dim), minval=-bound, maxval=bound,
                                dtype=jnp.float32)
    bias = jax.random.uniform(kb, (1,), minval=-bound, maxval=bound,
                              dtype=jnp.float32)

    out = logistic_regression(x, weight, bias)
    out = jax.block_until_ready(out)
    ref = jax.nn.sigmoid(x @ weight.T + bias)
    assert out.shape == (batch, 1)
    assert jnp.allclose(out, ref, atol=1e-5, rtol=1e-5), "mismatch vs reference"

    # Also exercise the non-multiple-of-tile (padded) batch path.
    x2 = jax.random.normal(kx2, (10, input_dim), dtype=jnp.float32)
    out2 = jax.block_until_ready(logistic_regression(x2, weight, bias))
    ref2 = jax.nn.sigmoid(x2 @ weight.T + bias)
    assert out2.shape == (10, 1)
    assert jnp.allclose(out2, ref2, atol=1e-5, rtol=1e-5), "mismatch vs reference (padded)"

    print("KERNEL_OK")
</pallas_src>

<mosaic_0001>
module attributes {stable_mosaic.version = 11 : i64} {
  func.func @logistic_kernel(%arg0: i32, %arg1: memref<64x128xf32, #tpu.memory_space<vmem>>, %arg2: memref<1x128xf32, #tpu.memory_space<vmem>>, %arg3: memref<1xf32, #tpu.memory_space<smem>>, %arg4: memref<64x1xf32, #tpu.memory_space<vmem>>) attributes {dimension_semantics = [#tpu.dimension_semantics<parallel>], iteration_bounds = array<i64: 1>, scalar_prefetch = 0 : i64, scratch_operands = 0 : i64, tpu.core_type = #tpu.core_type<tc>, window_params = [{transform_indices = @transform_0, window_bounds = array<i64: 64, 128>}, {pipeline_mode = #tpu.pipeline_mode<synchronous>, transform_indices = @transform_1, window_bounds = array<i64: 1, 128>}, {transform_indices = @transform_2, window_bounds = array<i64: 1>}, {transform_indices = @transform_3, window_bounds = array<i64: 64, 1>}]} {
    %c0 = arith.constant 0 : index
    %c0_0 = arith.constant 0 : index
    %0 = vector.load %arg1[%c0, %c0_0] : memref<64x128xf32, #tpu.memory_space<vmem>>, vector<64x128xf32>
    %c0_1 = arith.constant 0 : index
    %c0_2 = arith.constant 0 : index
    %1 = vector.load %arg2[%c0_1, %c0_2] : memref<1x128xf32, #tpu.memory_space<vmem>>, vector<1x128xf32>
    %c0_3 = arith.constant 0 : index
    %2 = memref.load %arg3[%c0_3] : memref<1xf32, #tpu.memory_space<smem>>
    %3 = vector.broadcast %1 : vector<1x128xf32> to vector<64x128xf32>
    %4 = arith.mulf %0, %3 : vector<64x128xf32>
    %cst = arith.constant dense<0.000000e+00> : vector<64xf32>
    %5 = vector.multi_reduction <add>, %4, %cst [1] : vector<64x128xf32> to vector<64xf32>
    %6 = vector.shape_cast %5 : vector<64xf32> to vector<64x1xf32>
    %7 = vector.broadcast %2 : f32 to vector<64x1xf32>
    %8 = arith.addf %6, %7 : vector<64x1xf32>
    %9 = arith.negf %8 : vector<64x1xf32>
    %10 = math.exp %9 : vector<64x1xf32>
    %cst_4 = arith.constant 1.000000e+00 : f32
    %11 = vector.broadcast %cst_4 : f32 to vector<64x1xf32>
    %12 = arith.addf %11, %10 : vector<64x1xf32>
    %13 = arith.divf %11, %12 : vector<64x1xf32>
    %c0_5 = arith.constant 0 : index
    %c0_6 = arith.constant 0 : index
    %14 = vector.load %arg4[%c0_5, %c0_6] : memref<64x1xf32, #tpu.memory_space<vmem>>, vector<64x1xf32>
    tpu.vector_store %arg4[%c0_5, %c0_6], %13 {strides = array<i32>} : memref<64x1xf32, #tpu.memory_space<vmem>>, vector<64x1xf32>,
    return
  }
  func.func @transform_0(%arg0: i32) -> (i32, i32) {
    %c0_i32 = arith.constant 0 : i32
    %c0_i32_0 = arith.constant 0 : i32
    return %arg0, %c0_i32 : i32, i32
  }
  func.func @transform_1(%arg0: i32) -> (i32, i32) {
    %c0_i32 = arith.constant 0 : i32
    %c0_i32_0 = arith.constant 0 : i32
    %c0_i32_1 = arith.constant 0 : i32
    return %c0_i32, %c0_i32_0 : i32, i32
  }
  func.func @transform_2(%arg0: i32) -> i32 {
    %c0_i32 = arith.constant 0 : i32
    %c0_i32_0 = arith.constant 0 : i32
    return %c0_i32 : i32
  }
  func.func @transform_3(%arg0: i32) -> (i32, i32) {
    %c0_i32 = arith.constant 0 : i32
    %c0_i32_0 = arith.constant 0 : i32
    return %arg0, %c0_i32 : i32, i32
  }
}

</mosaic_0001>

<bundles_post_ra>
// kernel: tpu_custom_call.1
= control target key start
LH: loop header
LB: loop body
LE: loop exit
PB: predicated region body
PF: predicated region fallthrough
CT: control target
= control target key end

     0   :  { %9 = vsyncpa [#allocation4], 0  ;;  %s208_s12 = smov [#allocation3]   ;;  %s281_s0 = inlined_call_operand.hbm [shape: f32[64,128], index: 0, kind: input, shape index: {}]   ;;  %s282_s1 = inlined_call_operand.vmem [shape: f32[1,128], index: 1, kind: input, shape index: {}]   ;;  %s283_s2 = inlined_call_operand.<no memory space> [shape: f32[1], index: 2, kind: input, shape index: {}]   ;;  %s284_s3 = inlined_call_operand.vmem [shape: f32[64,1], index: 3, kind: output, shape index: {}]  }
   0x1   :  { %s15_s13 = sshll.u32 %s208_s12, 4  ;;  %s184_s16 = scalar_lea.hbm %s281_s0, 1024  ;;  %s16_s13 = int_to_ptr.vmem [resolvable:$true] %s15_s13 }
   0x2   :  { %p185_p0 = scmp.ne.s32.totalorder %s281_s0, %s184_s16  ;;  %p188_p1 = scmp.lt.u32.totalorder %s184_s16, %s281_s0 }
   0x4   :  { %p190_p2 = pnand %p188_p1, %p185_p0 }
   0x6   :  { %193 = shalt.err (!%p190_p2)
}
   0x7   :  { %s194_s21 = scalar_lea.vmem %s16_s13, 1024  ;;  %p199_p4 = scmp.lt.s32.totalorder %s16_s13, %s16_s13 }
   0x8   :  { %p195_p3 = scmp.ne.s32.totalorder %s16_s13, %s194_s21  ;;  %p200_p5 = scmp.lt.s32.totalorder %s194_s21, %s194_s21 }
   0xa   :  { %p201_p6 = por %p200_p5, %p199_p4 }
   0xc   :  { %p202_p7 = pnand %p201_p6, %p195_p3 }
   0xe   :  { %205 = shalt.err (!%p202_p7)
}
   0xf   :  { %s209_s22 = smov 128   ;;  %s210_s23 = smov 8  }
  0x10   :  { %21 = dma.hbm_to_vmem [thread:$0]  %s281_s0, 1024, %s16_s13, [#allocation4], %s209_s22, %s209_s22, %s210_s23  }
  0x11   :  { %206 = dma.done.wait [#allocation4], 1024  }
  0x12   :  { %207 = vsyncadd [#allocation4], 4294966272  ;;  %v31_v0 = vld [vmem:[#allocation3 + $0x10] sm:$0xff]  ;;  %v140_v1 = vld [vmem:[%s282_s1] ss:$0 sm:$0xff]  ;;  %v69_v17 = vstv %s283_s2  ;;  %vm126_vm0 = vcmask 7168  }
  0x13   :  { %v29_v2 = vld [vmem:[#allocation3] sm:$0xff]  ;;  %v47_v3 = vmul.f32 %v140_v1, %v31_v0  ;;  %v32_v5 = vld [vmem:[#allocation3 + $0x18] sm:$0xff]  ;;  %v30_v6 = vld [vmem:[#allocation3 + $0x8] sm:$0xff] }
  0x14   :  { %v45_v4 = vmul.f32 %v140_v1, %v29_v2  ;;  %v48_v7 = vmul.f32 %v140_v1, %v32_v5  ;;  %v46_v8 = vmul.f32 %v140_v1, %v30_v6  ;;  %v34_v9 = vld [vmem:[#allocation3 + $0x28] sm:$0xff]  ;;  %v33_v10 = vld [vmem:[#allocation3 + $0x20] sm:$0xff]  ;;  %v36_v13 = vld [vmem:[#allocation3 + $0x38] sm:$0xff] }
  0x15   :  { %57 = vadd.xlane.f32.xlu1 %v47_v3  ;;  %v50_v11 = vmul.f32 %v140_v1, %v34_v9  ;;  %v49_v12 = vmul.f32 %v140_v1, %v33_v10  ;;  %v35_v14 = vld [vmem:[#allocation3 + $0x30] sm:$0xff]  ;;  %v52_v15 = vmul.f32 %v140_v1, %v36_v13 }
  0x16   :  { %53 = vadd.xlane.f32.xlu0 %v45_v4  ;;  %v51_v16 = vmul.f32 %v140_v1, %v35_v14 }
  0x19   :  { %59 = vadd.xlane.f32.xlu1 %v48_v7 }
  0x1a   :  { %55 = vadd.xlane.f32.xlu0 %v46_v8 }
  0x1d   :  { %63 = vadd.xlane.f32.xlu1 %v50_v11 }
  0x1e   :  { %61 = vadd.xlane.f32.xlu0 %v49_v12 }
  0x21   :  { %67 = vadd.xlane.f32.xlu1 %v52_v15 }
  0x22   :  { %65 = vadd.xlane.f32.xlu0 %v51_v16 }
  0xa2   :  { %v58_v18 = vpop.xlane.xlu1 %57 }
  0xa3   :  { %v54_v19 = vpop.xlane.xlu0 %53  ;;  %v72_v20 = vadd.f32 %v69_v17, %v58_v18 }
  0xa4   :  { %v70_v21 = vadd.f32 %v69_v17, %v54_v19 }
  0xa5   :  { %v143_v22 = vmul.f32 -1.442695, %v72_v20 }
  0xa6   :  { %v141_v23 = vmul.f32 -1.442695, %v70_v21  ;;  %v60_v24 = vpop.xlane.xlu1 %59 }
  0xa7   :  { %v56_v25 = vpop.xlane.xlu0 %55  ;;  %152 = vpow2.f32 %v143_v22  ;;  %v73_v26 = vadd.f32 %v69_v17, %v60_v24 }
  0xa8   :  { %v71_v27 = vadd.f32 %v69_v17, %v56_v25  ;;  %154 = vpow2.f32 %v141_v23 }
  0xa9   :  { %v144_v28 = vmul.f32 -1.442695, %v73_v26 }
  0xaa   :  { %v142_v29 = vmul.f32 -1.442695, %v71_v27  ;;  %v64_v30 = vpop.xlane.xlu1 %63 }
  0xab   :  { %v62_v31 = vpop.xlane.xlu0 %61  ;;  %156 = vpow2.f32 %v144_v28  ;;  %v75_v32 = vadd.f32 %v69_v17, %v64_v30 }
  0xac   :  { %v74_v33 = vadd.f32 %v69_v17, %v62_v31  ;;  %158 = vpow2.f32 %v142_v29 }
  0xad   :  { %v146_v34 = vmul.f32 -1.442695, %v75_v32 }
  0xae   :  { %v145_v35 = vmul.f32 -1.442695, %v74_v33  ;;  %v68_v36 = vpop.xlane.xlu1 %67 }
  0xaf   :  { %v66_v37 = vpop.xlane.xlu0 %65  ;;  %160 = vpow2.f32 %v146_v34  ;;  %v77_v38 = vadd.f32 %v69_v17, %v68_v36 }
  0xb0   :  { %v76_v39 = vadd.f32 %v69_v17, %v66_v37  ;;  %162 = vpow2.f32 %v145_v35 }
  0xb1   :  { %v153_v40 = vpop.eup %152  ;;  %v148_v41 = vmul.f32 -1.442695, %v77_v38 }
  0xb2   :  { %v155_v42 = vpop.eup %154  ;;  %v104_v43 = vadd.f32 1.0, %v153_v40  ;;  %v147_v44 = vmul.f32 -1.442695, %v76_v39 }
  0xb3   :  { %v102_v45 = vadd.f32 1.0, %v155_v42  ;;  %164 = vpow2.f32 %v148_v41 }
  0xb4   :  { %166 = vrcp.f32 %v104_v43 }
  0xb5   :  { %v157_v46 = vpop.eup %156  ;;  %168 = vrcp.f32 %v102_v45 }
  0xb6   :  { %v159_v47 = vpop.eup %158  ;;  %v105_v48 = vadd.f32 1.0, %v157_v46  ;;  %170 = vpow2.f32 %v147_v44 }
  0xb7   :  { %v103_v49 = vadd.f32 1.0, %v159_v47 }
  0xb8   :  { %172 = vrcp.f32 %v105_v48 }
  0xb9   :  { %v161_v50 = vpop.eup %160  ;;  %174 = vrcp.f32 %v103_v49 }
  0xba   :  { %v163_v51 = vpop.eup %162  ;;  %v107_v52 = vadd.f32 1.0, %v161_v50 }
  0xbb   :  { %v106_v53 = vadd.f32 1.0, %v163_v51 }
  0xbc   :  { %176 = vrcp.f32 %v107_v52 }
  0xbd   :  { %v165_v54 = vpop.eup %164  ;;  %178 = vrcp.f32 %v106_v53 }
  0xbe   :  { %v167_v55 = vpop.eup %166  ;;  %v109_v56 = vadd.f32 1.0, %v165_v54 }
  0xbf   :  { %v169_v57 = vpop.eup %168  ;;  %129 = vst.msk [vmem:[%s284_s3 + $0x10] sm:$0xff] %vm126_vm0, %v167_v55 }
  0xc0   :  { %v171_v58 = vpop.eup %170  ;;  %127 = vst.msk [vmem:[%s284_s3] sm:$0xff] %vm126_vm0, %v169_v57  ;;  %180 = vrcp.f32 %v109_v56 }
  0xc1   :  { %v108_v59 = vadd.f32 1.0, %v171_v58 }
  0xc2   :  { %v173_v60 = vpop.eup %172 }
  0xc3   :  { %v175_v61 = vpop.eup %174  ;;  %130 = vst.msk [vmem:[%s284_s3 + $0x18] sm:$0xff] %vm126_vm0, %v173_v60  ;;  %182 = vrcp.f32 %v108_v59 }
  0xc4   :  { %128 = vst.msk [vmem:[%s284_s3 + $0x8] sm:$0xff] %vm126_vm0, %v175_v61 }
  0xc6   :  { %v177_v62 = vpop.eup %176 }
  0xc7   :  { %v179_v63 = vpop.eup %178  ;;  %132 = vst.msk [vmem:[%s284_s3 + $0x28] sm:$0xff] %vm126_vm0, %v177_v62 }
  0xc8   :  { %131 = vst.msk [vmem:[%s284_s3 + $0x20] sm:$0xff] %vm126_vm0, %v179_v63 }
  0xca   :  { %v181_v0 = vpop.eup %180 }
  0xcb   :  { %134 = vst.msk [vmem:[%s284_s3 + $0x38] sm:$0xff] %vm126_vm0, %v181_v0 }
  0xcd   :  { %v183_v1 = vpop.eup %182 }
  0xce   :  { %133 = vst.msk [vmem:[%s284_s3 + $0x30] sm:$0xff] %vm126_vm0, %v183_v1 }
  0xcf   :  { %139 = vsyncpa [#allocation4], 1 }

</bundles_post_ra>
